<compile_context>
chip_gen: v7x
topology: tpu7x:2x2x1
jax: 0.10.0
libtpu: 0.0.40
codegen_flags: <defaults>
</compile_context>

<pallas_src>
import jax
import jax.numpy as jnp
import numpy as np
from jax.experimental import pallas as pl
from jax.experimental.pallas import tpu as pltpu

BN_EPS = 1e-5


def _bn_relu_group(h, g_blk, b, gamma, beta):
    """Training-mode BatchNorm1d + ReLU, per-group stats via layout-preserving
    reshape (G_BLK*B, H) -> (G_BLK, B, H) and a sublane reduction over axis=1."""
    hdim = h.shape[-1]
    inv_b = 1.0 / b
    hg = h.reshape(g_blk, b, hdim)
    s1 = jnp.sum(hg, axis=1, keepdims=True)            # (G_BLK, 1, H)
    s2 = jnp.sum(hg * hg, axis=1, keepdims=True)       # (G_BLK, 1, H)
    mean = s1 * inv_b
    var = jnp.maximum(s2 * inv_b - mean * mean, 0.0)   # biased variance, clamped >= 0
    scale = gamma * jax.lax.rsqrt(var + BN_EPS)        # gamma / sqrt(var + eps)
    shift = beta - mean * scale                        # folded shift
    out = jnp.maximum(hg * scale + shift, 0.0)         # single affine + ReLU
    return out.reshape(g_blk * b, hdim)


def diffusion_kernel(xn_ref, t_ref, w1x_ref, vec1_ref, w2_ref, vec2_ref,
                     w3_ref, b3_ref, loss_ref):
    # xn_ref: (2, G_BLK, B, F)   [0]=x, [1]=noise
    # t_ref : (G_BLK, B, 1)
    # vec1_ref: (4, H0) rows = [w1t, b1, gamma1, beta1]
    # vec2_ref: (3, H1) rows = [b2, gamma2, beta2]
    # loss_ref: (G_BLK, 128)
    g_blk, b, f = xn_ref.shape[1], xn_ref.shape[2], xn_ref.shape[3]
    gb = g_blk * b

    x = xn_ref[0].reshape(gb, f)
    noise = xn_ref[1].reshape(gb, f)
    t = t_ref[...].reshape(gb, 1)

    w1t = vec1_ref[0:1, :]
    b1 = vec1_ref[1:2, :]
    g1 = vec1_ref[2:3, :]
    be1 = vec1_ref[3:4, :]
    b2 = vec2_ref[0:1, :]
    g2 = vec2_ref[1:2, :]
    be2 = vec2_ref[2:3, :]

    # ---- add_noise (beta(t) == 1); single exp, exp(-t/2) = sqrt(exp(-t)) ----
    e = jnp.exp(-t)
    x_noisy = jnp.sqrt(e) * x + jnp.sqrt(1.0 - e) * noise

    # ---- input_fc (concat with t folded into w1t row) + per-group BN + ReLU ----
    h = (jnp.dot(x_noisy, w1x_ref[...], preferred_element_type=jnp.float32)
         + t * w1t + b1)
    h = _bn_relu_group(h, g_blk, b, g1, be1)

    # ---- hidden layer + per-group BN + ReLU ----
    h = jnp.dot(h, w2_ref[...], preferred_element_type=jnp.float32) + b2
    h = _bn_relu_group(h, g_blk, b, g2, be2)

    # ---- output_fc ----
    pred = jnp.dot(h, w3_ref[...], preferred_element_type=jnp.float32) + b3_ref[...]

    # ---- loss per group: mean over batch of sum over features of squared error ----
    diff = noise - pred                                        # (GB, F)
    per_sample = jnp.sum(diff * diff, axis=1, keepdims=True)   # (GB, 1)
    per_group = jnp.sum(per_sample.reshape(g_blk, b, 1), axis=1) * (1.0 / b)  # (G_BLK,1)
    # Lane-dense store for the whole step (unmasked vst); host reads [:, 0].
    loss_ref[...] = jnp.broadcast_to(per_group, loss_ref.shape)


def _default_grid_steps(G):
    """2 steps on v7x (one per TensorCore), 1 step on single-TC chips."""
    try:
        kind = jax.devices()[0].device_kind.lower()
    except Exception:
        kind = ""
    if "v7" in kind and G >= 2 and G % 2 == 0:
        return 2
    return 1


def diffusion_forward_losses(x, noise, rand_t, params, grid_steps=None):
    """G independent forward passes in a single pallas_call.

    x, noise: (G, B, F); rand_t: (G, B, 1). Returns (G,) losses.
    BatchNorm statistics are computed per minibatch (group), matching
    module.forward applied to each minibatch independently.
    """
    (w1x, w1t, b1, g1, be1, w2, b2, g2, be2, w3, b3) = params
    G, B, F = x.shape
    H0 = w1x.shape[1]
    H1 = w2.shape[1]
    OUT = w3.shape[1]

    if grid_steps is None:
        grid_steps = _default_grid_steps(G)
    assert G % grid_steps == 0, "G must be divisible by grid_steps"
    g_blk = G // grid_steps

    # Pack operands to shorten the DMA prologue (14 -> 8 buffers).
    xn = jnp.stack([x, noise], axis=0)                   # (2, G, B, F)
    vec1 = jnp.concatenate([w1t, b1, g1, be1], axis=0)   # (4, H0)
    vec2 = jnp.concatenate([b2, g2, be2], axis=0)        # (3, H1)

    vmem = pltpu.MemorySpace.VMEM

    def shared_spec(arr):
        nd = arr.ndim
        return pl.BlockSpec(arr.shape, lambda s, nd=nd: (0,) * nd, memory_space=vmem)

    in_specs = [
        pl.BlockSpec((2, g_blk, B, F), lambda s: (0, s, 0, 0), memory_space=vmem),
        pl.BlockSpec((g_blk, B, 1), lambda s: (s, 0, 0), memory_space=vmem),
        shared_spec(w1x), shared_spec(vec1),
        shared_spec(w2), shared_spec(vec2),
        shared_spec(w3), shared_spec(b3),
    ]
    out_specs = pl.BlockSpec((None, g_blk, 128), lambda s: (s, 0, 0), memory_space=vmem)

    # Advisory cost estimate for XLA scheduling.
    gb = g_blk * B
    matmul_flops = 2 * gb * (F * H0 + H0 * H1 + H1 * OUT)
    ew_flops = gb * (10 * F + 12 * H0 + 12 * H1)
    transcendentals = gb + 2 * g_blk * (H0 + H1)
    param_bytes = sum(int(np.prod(p.shape)) * 4 for p in params)
    bytes_accessed = (int(xn.size + rand_t.size) * 4 + param_bytes
                      + grid_steps * g_blk * 128 * 4)

    out = pl.pallas_call(
        diffusion_kernel,
        out_shape=jax.ShapeDtypeStruct((grid_steps, g_blk, 128), jnp.float32),
        grid=(grid_steps,),
        in_specs=in_specs,
        out_specs=out_specs,
        compiler_params=pltpu.CompilerParams(
            # Independent groups per step -> "parallel": v7x's 2 TCs split the grid.
            dimension_semantics=("parallel",),
        ),
        cost_estimate=pl.CostEstimate(
            flops=grid_steps * (matmul_flops + ew_flops),
            transcendentals=grid_steps * transcendentals,
            bytes_accessed=bytes_accessed,
        ),
    )(xn, rand_t, w1x, vec1, w2, vec2, w3, b3)
    return out[:, :, 0].reshape(G)


def diffusion_forward_loss(x, noise, rand_t, params):
    """Single-batch module.forward semantics (G == 1)."""
    return diffusion_forward_losses(x[None], noise[None], rand_t[None], params)[0]


def init_params(key, input_size, hidden_size, out_size):
    """Deterministic synthetic parameter init (shapes follow the nn.Module)."""
    h0, h1 = hidden_size
    ks = jax.random.split(key, 6)
    # input_fc: Linear(input_size + 1, h0) -> split cat-weight into x part and t part
    w1_full = 0.1 * jax.random.normal(ks[0], (input_size + 1, h0), jnp.float32)
    w1x = w1_full[:input_size, :]                 # (input_size, h0)
    w1t = w1_full[input_size:, :]                 # (1, h0)
    b1 = 0.1 * jax.random.normal(ks[1], (1, h0), jnp.float32)
    g1 = jnp.ones((1, h0), jnp.float32)           # BN gamma init
    be1 = jnp.zeros((1, h0), jnp.float32)         # BN beta init
    # hidden layer: Linear(h0, h1)
    w2 = 0.1 * jax.random.normal(ks[2], (h0, h1), jnp.float32)
    b2 = 0.1 * jax.random.normal(ks[3], (1, h1), jnp.float32)
    g2 = jnp.ones((1, h1), jnp.float32)
    be2 = jnp.zeros((1, h1), jnp.float32)
    # output_fc: Linear(h1, out_size)
    w3 = 0.1 * jax.random.normal(ks[4], (h1, out_size), jnp.float32)
    b3 = 0.1 * jax.random.normal(ks[5], (1, out_size), jnp.float32)
    return (w1x, w1t, b1, g1, be1, w2, b2, g2, be2, w3, b3)


def reference_loss(x, noise, rand_t, params):
    """Pure-JAX reference of the same forward pass (two-pass BN, like PyTorch)."""
    (w1x, w1t, b1, g1, be1, w2, b2, g2, be2, w3, b3) = params

    def bn(h, gamma, beta):
        mean = jnp.mean(h, axis=0, keepdims=True)
        var = jnp.mean((h - mean) ** 2, axis=0, keepdims=True)
        return (h - mean) * jax.lax.rsqrt(var + BN_EPS) * gamma + beta

    x_noisy = jnp.exp(-0.5 * rand_t) * x + jnp.sqrt(1.0 - jnp.exp(-rand_t)) * noise
    h = x_noisy @ w1x + rand_t * w1t + b1
    h = jnp.maximum(bn(h, g1, be1), 0.0)
    h = h @ w2 + b2
    h = jnp.maximum(bn(h, g2, be2), 0.0)
    pred = h @ w3 + b3
    return jnp.mean(jnp.sum((noise - pred) ** 2, axis=1))


if __name__ == "__main__":
    # Shapes consistent with Diffusion(input_size=16, hidden_size=[32, 32],
    # out_size=16, time_steps=100); batch = 8 per minibatch, G = 8 independent
    # minibatches (e.g. diffusion-step loop folded into G) in ONE gridded launch.
    B, INPUT, OUT = 8, 16, 16
    HIDDEN = [32, 32]
    TIME_STEPS = 100
    G = 8

    key = jax.random.PRNGKey(0)
    k_x, k_noise, k_t, k_params = jax.random.split(key, 4)

    x = jax.random.normal(k_x, (G, B, INPUT), jnp.float32)
    # add_noise internals (host-side RNG glue, math done in-kernel):
    noise = jax.random.normal(k_noise, (G, B, INPUT), jnp.float32)
    rand_t = (
        jax.random.randint(k_t, (G, B, 1), 1, TIME_STEPS + 1).astype(jnp.float32)
        / TIME_STEPS
    )

    params = init_params(k_params, INPUT, HIDDEN, OUT)

    # Single-batch path (exact module.forward semantics for one batch).
    loss0 = diffusion_forward_loss(x[0], noise[0], rand_t[0], params)
    jax.block_until_ready(loss0)

    # G independent minibatches, blocked into 1 (v5e/v6e) or 2 (v7x) grid steps.
    losses = diffusion_forward_losses(x, noise, rand_t, params)
    jax.block_until_ready(losses)

    ref = jnp.stack([reference_loss(x[g], noise[g], rand_t[g], params) for g in range(G)])
    np.testing.assert_allclose(np.asarray(losses), np.asarray(ref), rtol=1e-3, atol=1e-3)
    np.testing.assert_allclose(np.asarray(loss0), np.asarray(ref[0]), rtol=1e-3, atol=1e-3)

    print("KERNEL_OK")
</pallas_src>

<mosaic_0001>
module attributes {stable_mosaic.version = 11 : i64} {
  func.func @diffusion_kernel(%arg0: i32, %arg1: memref<2x1x8x16xf32, #tpu.memory_space<vmem>>, %arg2: memref<1x8x1xf32, #tpu.memory_space<vmem>>, %arg3: memref<16x32xf32, #tpu.memory_space<vmem>>, %arg4: memref<4x32xf32, #tpu.memory_space<vmem>>, %arg5: memref<32x32xf32, #tpu.memory_space<vmem>>, %arg6: memref<3x32xf32, #tpu.memory_space<vmem>>, %arg7: memref<32x16xf32, #tpu.memory_space<vmem>>, %arg8: memref<1x16xf32, #tpu.memory_space<vmem>>, %arg9: memref<1x1x128xf32, #tpu.memory_space<vmem>>) attributes {dimension_semantics = [#tpu.dimension_semantics<parallel>], iteration_bounds = array<i64: 1>, scalar_prefetch = 0 : i64, scratch_operands = 0 : i64, tpu.core_type = #tpu.core_type<tc>, window_params = [{transform_indices = @transform_0, window_bounds = array<i64: 2, 1, 8, 16>}, {transform_indices = @transform_1, window_bounds = array<i64: 1, 8, 1>}, {pipeline_mode = #tpu.pipeline_mode<synchronous>, transform_indices = @transform_2, window_bounds = array<i64: 16, 32>}, {pipeline_mode = #tpu.pipeline_mode<synchronous>, transform_indices = @transform_3, window_bounds = array<i64: 4, 32>}, {pipeline_mode = #tpu.pipeline_mode<synchronous>, transform_indices = @transform_4, window_bounds = array<i64: 32, 32>}, {pipeline_mode = #tpu.pipeline_mode<synchronous>, transform_indices = @transform_5, window_bounds = array<i64: 3, 32>}, {pipeline_mode = #tpu.pipeline_mode<synchronous>, transform_indices = @transform_6, window_bounds = array<i64: 32, 16>}, {pipeline_mode = #tpu.pipeline_mode<synchronous>, transform_indices = @transform_7, window_bounds = array<i64: 1, 16>}, {transform_indices = @transform_8, window_bounds = array<i64: 1, 1, 128>}]} {
    %c0 = arith.constant 0 : index
    %c0_0 = arith.constant 0 : index
    %c0_1 = arith.constant 0 : index
    %c0_2 = arith.constant 0 : index
    %0 = vector.load %arg1[%c0, %c0_0, %c0_1, %c0_2] : memref<2x1x8x16xf32, #tpu.memory_space<vmem>>, vector<1x1x8x16xf32>
    %1 = vector.shape_cast %0 : vector<1x1x8x16xf32> to vector<1x8x16xf32>
    %2 = vector.shape_cast %1 : vector<1x8x16xf32> to vector<8x16xf32>
    %c1 = arith.constant 1 : index
    %c0_3 = arith.constant 0 : index
    %c0_4 = arith.constant 0 : index
    %c0_5 = arith.constant 0 : index
    %3 = vector.load %arg1[%c1, %c0_3, %c0_4, %c0_5] : memref<2x1x8x16xf32, #tpu.memory_space<vmem>>, vector<1x1x8x16xf32>
    %4 = vector.shape_cast %3 : vector<1x1x8x16xf32> to vector<1x8x16xf32>
    %5 = vector.shape_cast %4 : vector<1x8x16xf32> to vector<8x16xf32>
    %c0_6 = arith.constant 0 : index
    %c0_7 = arith.constant 0 : index
    %c0_8 = arith.constant 0 : index
    %6 = vector.load %arg2[%c0_6, %c0_7, %c0_8] : memref<1x8x1xf32, #tpu.memory_space<vmem>>, vector<1x8x1xf32>
    %7 = vector.shape_cast %6 : vector<1x8x1xf32> to vector<8x1xf32>
    %c0_9 = arith.constant 0 : index
    %c0_10 = arith.constant 0 : index
    %8 = vector.load %arg4[%c0_9, %c0_10] : memref<4x32xf32, #tpu.memory_space<vmem>>, vector<1x32xf32>
    %c1_11 = arith.constant 1 : index
    %c0_12 = arith.constant 0 : index
    %9 = vector.load %arg4[%c1_11, %c0_12] : memref<4x32xf32, #tpu.memory_space<vmem>>, vector<1x32xf32>
    %c2 = arith.constant 2 : index
    %c0_13 = arith.constant 0 : index
    %10 = vector.load %arg4[%c2, %c0_13] : memref<4x32xf32, #tpu.memory_space<vmem>>, vector<1x32xf32>
    %c3 = arith.constant 3 : index
    %c0_14 = arith.constant 0 : index
    %11 = vector.load %arg4[%c3, %c0_14] : memref<4x32xf32, #tpu.memory_space<vmem>>, vector<1x32xf32>
    %c0_15 = arith.constant 0 : index
    %c0_16 = arith.constant 0 : index
    %12 = vector.load %arg6[%c0_15, %c0_16] : memref<3x32xf32, #tpu.memory_space<vmem>>, vector<1x32xf32>
    %c1_17 = arith.constant 1 : index
    %c0_18 = arith.constant 0 : index
    %13 = vector.load %arg6[%c1_17, %c0_18] : memref<3x32xf32, #tpu.memory_space<vmem>>, vector<1x32xf32>
    %c2_19 = arith.constant 2 : index
    %c0_20 = arith.constant 0 : index
    %14 = vector.load %arg6[%c2_19, %c0_20] : memref<3x32xf32, #tpu.memory_space<vmem>>, vector<1x32xf32>
    %cst = arith.constant 0.000000e+00 : f32
    %15 = vector.broadcast %cst : f32 to vector<8x1xf32>
    %16 = arith.subf %15, %7 : vector<8x1xf32>
    %17 = math.exp %16 : vector<8x1xf32>
    %18 = math.sqrt %17 : vector<8x1xf32>
    %19 = vector.broadcast %18 : vector<8x1xf32> to vector<8x16xf32>
    %20 = arith.mulf %19, %2 : vector<8x16xf32>
    %cst_21 = arith.constant 1.000000e+00 : f32
    %21 = vector.broadcast %cst_21 : f32 to vector<8x1xf32>
    %22 = arith.subf %21, %17 : vector<8x1xf32>
    %23 = math.sqrt %22 : vector<8x1xf32>
    %24 = vector.broadcast %23 : vector<8x1xf32> to vector<8x16xf32>
    %25 = arith.mulf %24, %5 : vector<8x16xf32>
    %26 = arith.addf %20, %25 : vector<8x16xf32>
    %c0_22 = arith.constant 0 : index
    %c0_23 = arith.constant 0 : index
    %27 = vector.load %arg3[%c0_22, %c0_23] : memref<16x32xf32, #tpu.memory_space<vmem>>, vector<16x32xf32>
    %cst_24 = arith.constant dense<0.000000e+00> : vector<8x32xf32>
    %28 = tpu.matmul %26, %27, %cst_24 {dimension_numbers = #tpu.dot_dimension_numbers<[1], [0], [0], [1], [0, 0, 1, 1], [], []>} : vector<8x16xf32>, vector<16x32xf32>, vector<8x32xf32> -> vector<8x32xf32>
    %29 = vector.broadcast %7 : vector<8x1xf32> to vector<8x32xf32>
    %30 = vector.broadcast %8 : vector<1x32xf32> to vector<8x32xf32>
    %31 = arith.mulf %29, %30 : vector<8x32xf32>
    %32 = arith.addf %28, %31 : vector<8x32xf32>
    %33 = vector.broadcast %9 : vector<1x32xf32> to vector<8x32xf32>
    %34 = arith.addf %32, %33 : vector<8x32xf32>
    %35 = vector.shape_cast %34 : vector<8x32xf32> to vector<1x8x32xf32>
    %cst_25 = arith.constant dense<0.000000e+00> : vector<1x32xf32>
    %36 = vector.multi_reduction <add>, %35, %cst_25 [1] : vector<1x8x32xf32> to vector<1x32xf32>
    %37 = vector.shape_cast %36 : vector<1x32xf32> to vector<1x1x32xf32>
    %38 = arith.mulf %35, %35 : vector<1x8x32xf32>
    %cst_26 = arith.constant dense<0.000000e+00> : vector<1x32xf32>
    %39 = vector.multi_reduction <add>, %38, %cst_26 [1] : vector<1x8x32xf32> to vector<1x32xf32>
    %40 = vector.shape_cast %39 : vector<1x32xf32> to vector<1x1x32xf32>
    %cst_27 = arith.constant 1.250000e-01 : f32
    %41 = vector.broadcast %cst_27 : f32 to vector<1x1x32xf32>
    %42 = arith.mulf %37, %41 : vector<1x1x32xf32>
    %cst_28 = arith.constant 1.250000e-01 : f32
    %43 = vector.broadcast %cst_28 : f32 to vector<1x1x32xf32>
    %44 = arith.mulf %40, %43 : vector<1x1x32xf32>
    %45 = arith.mulf %42, %42 : vector<1x1x32xf32>
    %46 = arith.subf %44, %45 : vector<1x1x32xf32>
    %cst_29 = arith.constant 0.000000e+00 : f32
    %47 = vector.broadcast %cst_29 : f32 to vector<1x1x32xf32>
    %48 = arith.maximumf %46, %47 : vector<1x1x32xf32>
    %cst_30 = arith.constant 9.99999974E-6 : f32
    %49 = vector.broadcast %cst_30 : f32 to vector<1x1x32xf32>
    %50 = arith.addf %48, %49 : vector<1x1x32xf32>
    %51 = math.rsqrt %50 : vector<1x1x32xf32>
    %52 = vector.shape_cast %10 : vector<1x32xf32> to vector<1x1x32xf32>
    %53 = arith.mulf %52, %51 : vector<1x1x32xf32>
    %54 = arith.mulf %42, %53 : vector<1x1x32xf32>
    %55 = vector.shape_cast %11 : vector<1x32xf32> to vector<1x1x32xf32>
    %56 = arith.subf %55, %54 : vector<1x1x32xf32>
    %57 = vector.broadcast %53 : vector<1x1x32xf32> to vector<1x8x32xf32>
    %58 = arith.mulf %35, %57 : vector<1x8x32xf32>
    %59 = vector.broadcast %56 : vector<1x1x32xf32> to vector<1x8x32xf32>
    %60 = arith.addf %58, %59 : vector<1x8x32xf32>
    %cst_31 = arith.constant 0.000000e+00 : f32
    %61 = vector.broadcast %cst_31 : f32 to vector<1x8x32xf32>
    %62 = arith.maximumf %60, %61 : vector<1x8x32xf32>
    %63 = vector.shape_cast %62 : vector<1x8x32xf32> to vector<8x32xf32>
    %c0_32 = arith.constant 0 : index
    %c0_33 = arith.constant 0 : index
    %64 = vector.load %arg5[%c0_32, %c0_33] : memref<32x32xf32, #tpu.memory_space<vmem>>, vector<32x32xf32>
    %cst_34 = arith.constant dense<0.000000e+00> : vector<8x32xf32>
    %65 = tpu.matmul %63, %64, %cst_34 {dimension_numbers = #tpu.dot_dimension_numbers<[1], [0], [0], [1], [0, 0, 1, 1], [], []>} : vector<8x32xf32>, vector<32x32xf32>, vector<8x32xf32> -> vector<8x32xf32>
    %66 = vector.broadcast %12 : vector<1x32xf32> to vector<8x32xf32>
    %67 = arith.addf %65, %66 : vector<8x32xf32>
    %68 = vector.shape_cast %67 : vector<8x32xf32> to vector<1x8x32xf32>
    %cst_35 = arith.constant dense<0.000000e+00> : vector<1x32xf32>
    %69 = vector.multi_reduction <add>, %68, %cst_35 [1] : vector<1x8x32xf32> to vector<1x32xf32>
    %70 = vector.shape_cast %69 : vector<1x32xf32> to vector<1x1x32xf32>
    %71 = arith.mulf %68, %68 : vector<1x8x32xf32>
    %cst_36 = arith.constant dense<0.000000e+00> : vector<1x32xf32>
    %72 = vector.multi_reduction <add>, %71, %cst_36 [1] : vector<1x8x32xf32> to vector<1x32xf32>
    %73 = vector.shape_cast %72 : vector<1x32xf32> to vector<1x1x32xf32>
    %cst_37 = arith.constant 1.250000e-01 : f32
    %74 = vector.broadcast %cst_37 : f32 to vector<1x1x32xf32>
    %75 = arith.mulf %70, %74 : vector<1x1x32xf32>
    %cst_38 = arith.constant 1.250000e-01 : f32
    %76 = vector.broadcast %cst_38 : f32 to vector<1x1x32xf32>
    %77 = arith.mulf %73, %76 : vector<1x1x32xf32>
    %78 = arith.mulf %75, %75 : vector<1x1x32xf32>
    %79 = arith.subf %77, %78 : vector<1x1x32xf32>
    %cst_39 = arith.constant 0.000000e+00 : f32
    %80 = vector.broadcast %cst_39 : f32 to vector<1x1x32xf32>
    %81 = arith.maximumf %79, %80 : vector<1x1x32xf32>
    %cst_40 = arith.constant 9.99999974E-6 : f32
    %82 = vector.broadcast %cst_40 : f32 to vector<1x1x32xf32>
    %83 = arith.addf %81, %82 : vector<1x1x32xf32>
    %84 = math.rsqrt %83 : vector<1x1x32xf32>
    %85 = vector.shape_cast %13 : vector<1x32xf32> to vector<1x1x32xf32>
    %86 = arith.mulf %85, %84 : vector<1x1x32xf32>
    %87 = arith.mulf %75, %86 : vector<1x1x32xf32>
    %88 = vector.shape_cast %14 : vector<1x32xf32> to vector<1x1x32xf32>
    %89 = arith.subf %88, %87 : vector<1x1x32xf32>
    %90 = vector.broadcast %86 : vector<1x1x32xf32> to vector<1x8x32xf32>
    %91 = arith.mulf %68, %90 : vector<1x8x32xf32>
    %92 = vector.broadcast %89 : vector<1x1x32xf32> to vector<1x8x32xf32>
    %93 = arith.addf %91, %92 : vector<1x8x32xf32>
    %cst_41 = arith.constant 0.000000e+00 : f32
    %94 = vector.broadcast %cst_41 : f32 to vector<1x8x32xf32>
    %95 = arith.maximumf %93, %94 : vector<1x8x32xf32>
    %96 = vector.shape_cast %95 : vector<1x8x32xf32> to vector<8x32xf32>
    %c0_42 = arith.constant 0 : index
    %c0_43 = arith.constant 0 : index
    %97 = vector.load %arg7[%c0_42, %c0_43] : memref<32x16xf32, #tpu.memory_space<vmem>>, vector<32x16xf32>
    %cst_44 = arith.constant dense<0.000000e+00> : vector<8x16xf32>
    %98 = tpu.matmul %96, %97, %cst_44 {dimension_numbers = #tpu.dot_dimension_numbers<[1], [0], [0], [1], [0, 0, 1, 1], [], []>} : vector<8x32xf32>, vector<32x16xf32>, vector<8x16xf32> -> vector<8x16xf32>
    %c0_45 = arith.constant 0 : index
    %c0_46 = arith.constant 0 : index
    %99 = vector.load %arg8[%c0_45, %c0_46] : memref<1x16xf32, #tpu.memory_space<vmem>>, vector<1x16xf32>
    %100 = vector.broadcast %99 : vector<1x16xf32> to vector<8x16xf32>
    %101 = arith.addf %98, %100 : vector<8x16xf32>
    %102 = arith.subf %5, %101 : vector<8x16xf32>
    %103 = arith.mulf %102, %102 : vector<8x16xf32>
    %cst_47 = arith.constant dense<0.000000e+00> : vector<8xf32>
    %104 = vector.multi_reduction <add>, %103, %cst_47 [1] : vector<8x16xf32> to vector<8xf32>
    %105 = vector.shape_cast %104 : vector<8xf32> to vector<8x1xf32>
    %106 = vector.shape_cast %105 : vector<8x1xf32> to vector<1x8x1xf32>
    %cst_48 = arith.constant dense<0.000000e+00> : vector<1x1xf32>
    %107 = vector.multi_reduction <add>, %106, %cst_48 [1] : vector<1x8x1xf32> to vector<1x1xf32>
    %cst_49 = arith.constant 1.250000e-01 : f32
    %108 = vector.broadcast %cst_49 : f32 to vector<1x1xf32>
    %109 = arith.mulf %107, %108 : vector<1x1xf32>
    %110 = vector.shape_cast %109 : vector<1x1xf32> to vector<1x1xf32>
    %111 = vector.broadcast %110 : vector<1x1xf32> to vector<1x128xf32>
    %c0_50 = arith.constant 0 : index
    %c0_51 = arith.constant 0 : index
    %c0_52 = arith.constant 0 : index
    %112 = vector.load %arg9[%c0_50, %c0_51, %c0_52] : memref<1x1x128xf32, #tpu.memory_space<vmem>>, vector<1x1x128xf32>
    %113 = vector.shape_cast %112 : vector<1x1x128xf32> to vector<1x128xf32>
    %114 = vector.shape_cast %111 : vector<1x128xf32> to vector<1x1x128xf32>
    tpu.vector_store %arg9[%c0_50, %c0_51, %c0_52], %114 {strides = array<i32>} : memref<1x1x128xf32, #tpu.memory_space<vmem>>, vector<1x1x128xf32>,
    return
  }
  func.func @transform_0(%arg0: i32) -> (i32, i32, i32, i32) {
    %c0_i32 = arith.constant 0 : i32
    %c0_i32_0 = arith.constant 0 : i32
    %c0_i32_1 = arith.constant 0 : i32
    %c0_i32_2 = arith.constant 0 : i32
    return %c0_i32, %arg0, %c0_i32_0, %c0_i32_1 : i32, i32, i32, i32
  }
  func.func @transform_1(%arg0: i32) -> (i32, i32, i32) {
    %c0_i32 = arith.constant 0 : i32
    %c0_i32_0 = arith.constant 0 : i32
    %c0_i32_1 = arith.constant 0 : i32
    return %arg0, %c0_i32, %c0_i32_0 : i32, i32, i32
  }
  func.func @transform_2(%arg0: i32) -> (i32, i32) {
    %c0_i32 = arith.constant 0 : i32
    %c0_i32_0 = arith.constant 0 : i32
    %c0_i32_1 = arith.constant 0 : i32
    return %c0_i32, %c0_i32_0 : i32, i32
  }
  func.func @transform_3(%arg0: i32) -> (i32, i32) {
    %c0_i32 = arith.constant 0 : i32
    %c0_i32_0 = arith.constant 0 : i32
    %c0_i32_1 = arith.constant 0 : i32
    return %c0_i32, %c0_i32_0 : i32, i32
  }
  func.func @transform_4(%arg0: i32) -> (i32, i32) {
    %c0_i32 = arith.constant 0 : i32
    %c0_i32_0 = arith.constant 0 : i32
    %c0_i32_1 = arith.constant 0 : i32
    return %c0_i32, %c0_i32_0 : i32, i32
  }
  func.func @transform_5(%arg0: i32) -> (i32, i32) {
    %c0_i32 = arith.constant 0 : i32
    %c0_i32_0 = arith.constant 0 : i32
    %c0_i32_1 = arith.constant 0 : i32
    return %c0_i32, %c0_i32_0 : i32, i32
  }
  func.func @transform_6(%arg0: i32) -> (i32, i32) {
    %c0_i32 = arith.constant 0 : i32
    %c0_i32_0 = arith.constant 0 : i32
    %c0_i32_1 = arith.constant 0 : i32
    return %c0_i32, %c0_i32_0 : i32, i32
  }
  func.func @transform_7(%arg0: i32) -> (i32, i32) {
    %c0_i32 = arith.constant 0 : i32
    %c0_i32_0 = arith.constant 0 : i32
    %c0_i32_1 = arith.constant 0 : i32
    return %c0_i32, %c0_i32_0 : i32, i32
  }
  func.func @transform_8(%arg0: i32) -> (i32, i32, i32) {
    %c0_i32 = arith.constant 0 : i32
    %c0_i32_0 = arith.constant 0 : i32
    %c0_i32_1 = arith.constant 0 : i32
    return %arg0, %c0_i32, %c0_i32_0 : i32, i32, i32
  }
}

</mosaic_0001>

<bundles_post_ra>
// kernel: tpu_custom_call.1
= control target key start
LH: loop header
LB: loop body
LE: loop exit
PB: predicated region body
PF: predicated region fallthrough
CT: control target
= control target key end

     0   :  { %13 = vsyncpa [#allocation3], 0  ;;  %s727_s0 = inlined_call_operand.vmem [shape: f32[2,1,8,16], index: 0, kind: input, shape index: {}]   ;;  %s728_s1 = inlined_call_operand.vmem [shape: f32[1,8,1], index: 1, kind: input, shape index: {}]   ;;  %s729_s2 = inlined_call_operand.hbm [shape: f32[16,32], index: 2, kind: input, shape index: {}]   ;;  %s730_s3 = inlined_call_operand.vmem [shape: f32[4,32], index: 3, kind: input, shape index: {}]   ;;  %s731_s4 = inlined_call_operand.vmem [shape: f32[32,32], index: 4, kind: input, shape index: {}]   ;;  %s732_s5 = inlined_call_operand.vmem [shape: f32[3,32], index: 5, kind: input, shape index: {}]   ;;  %s733_s6 = inlined_call_operand.vmem [shape: f32[32,16], index: 6, kind: input, shape index: {}]   ;;  %s734_s7 = inlined_call_operand.vmem [shape: f32[1,16], index: 7, kind: input, shape index: {}]   ;;  %s735_s8 = inlined_call_operand.hbm [shape: f32[1,1,128], index: 8, kind: output, shape index: {}]  }
   0x1   :  { %14 = vsyncpa [#allocation4], 0  ;;  %s576_s27 = smov [#allocation2]   ;;  %s528_s9 = scalar_lea.hbm %s729_s2, 256 }
   0x2   :  { %s24_s28 = sshll.u32 %s576_s27, 4  ;;  %p529_p0 = scmp.ne.s32.totalorder %s729_s2, %s528_s9  ;;  %s25_s28 = int_to_ptr.vmem [resolvable:$true] %s24_s28 }
   0x3   :  { %p532_p1 = scmp.lt.u32.totalorder %s528_s9, %s729_s2 }
   0x5   :  { %p534_p2 = pnand %p532_p1, %p529_p0 }
   0x7   :  { %537 = shalt.err (!%p534_p2)
}
   0x8   :  { %s538_s14 = scalar_lea.vmem %s25_s28, 256  ;;  %p543_p4 = scmp.lt.s32.totalorder %s25_s28, %s25_s28 }
   0x9   :  { %p539_p3 = scmp.ne.s32.totalorder %s25_s28, %s538_s14  ;;  %p544_p5 = scmp.lt.s32.totalorder %s538_s14, %s538_s14 }
   0xb   :  { %p545_p6 = por %p544_p5, %p543_p4 }
   0xd   :  { %p546_p7 = pnand %p545_p6, %p539_p3 }
   0xf   :  { %549 = shalt.err (!%p546_p7)
}
  0x10   :  { %s577_s15 = smov 128   ;;  %s578_s16 = smov 8  }
  0x11   :  { %30 = dma.hbm_to_vmem [thread:$0]  %s729_s2, 256, %s25_s28, [#allocation3], %s577_s15, %s577_s15, %s578_s16  }
  0x12   :  { %572 = dma.done.wait [#allocation3], 256  }
  0x13   :  { %573 = vsyncadd [#allocation3], 4294967040  ;;  %v579_v0 = vmov 0   ;;  %v47_v1 = vld [vmem:[%s728_s1] sm:$0xff]  ;;  %v87_v17 = vld [vmem:[#allocation2 + $0x8] sm:$0xff]  ;;  %v580_v19 = vmov 0.0|0.0   ;;  %v203_v63 = vlaneseq }
  0x14   :  { %516 = vset.pattern.permute.xlu0 %v579_v0  ;;  %517 = vset.pattern.permute.xlu1 %v579_v0  ;;  %v55_v2 = vsub.f32 0.0, %v47_v1  ;;  %v86_v16 = vld [vmem:[#allocation2] sm:$0xff]  ;;  %vm581_vm4 = vmmov 0   ;;  %v582_v20 = vmov 0.0   ;;  %v653_v23 = vld [vmem:[%s727_s0 + $0x8] sm:$0xff]  ;;  %vm98_vm5 = vcmask 130048  }
  0x15   :  { %90 = vperm.xlu1 %517, %v47_v1   ;;  %v494_v18 = vpack.c.bf16 %v87_v17, %v86_v16  ;;  %493 = vmatprep.subr.bf16.mxu0 %v580_v19  ;;  %v44_v22 = vld [vmem:[%s727_s0] sm:$0xff]  ;;  %v215_v29 = vld [vmem:[%s731_s4 + $0x8] sm:$0xff]  ;;  %v216_v31 = vld [vmem:[%s731_s4 + $0x10] sm:$0xff]  ;;  %vm177_vm6 = vcmask 261120   ;;  %v204_v0 = vshrl.u32 %v203_v63, 7 }
  0x16   :  { %v56_v3 = vmul.f32 1.442695, %v55_v2  ;;  %496 = vmatprep.subr.bf16.mxu1 %v580_v19  ;;  %468 = vmatprep.mubr.msk.f32.mxu0 %vm581_vm4, %v582_v20  ;;  %v214_v28 = vld [vmem:[%s731_s4] sm:$0xff]  ;;  %v217_v32 = vld [vmem:[%s731_s4 + $0x18] sm:$0xff]  ;;  %v333_v16 = vld [vmem:[%s733_s6 + $0x10] sm:$0xff] }
  0x17   :  { %495 = vmatpush3.bf16.msra.mxu0 %v494_v18  ;;  %479 = vmatprep.mubr.msk.f32.mxu1 %vm581_vm4, %v582_v20  ;;  %v497_v30 = vpack.c.bf16 %v215_v29, %v214_v28  ;;  %v500_v33 = vpack.c.bf16 %v217_v32, %v216_v31  ;;  %v444_v34 = vld [vmem:[%s730_s3] ss:$0 sm:$0xff]  ;;  %v446_v37 = vld [vmem:[%s730_s3 + $0x1] ss:$0 sm:$0xff]  ;;  %v50_v1 = vld [vmem:[%s730_s3 + $0x2] sm:$0x1] }
  0x18   :  { %518 = vpow2.f32 %v56_v3  ;;  %502 = vmatprep.subr.bf16.mxu0 %v580_v19  ;;  %v205_v2 = vsub.s32 0, %v204_v0  ;;  %v334_v17 = vld [vmem:[%s733_s6 + $0x18] sm:$0xff] }
  0x19   :  { %498 = vmatpush3.bf16.msra.mxu1 %v497_v30  ;;  %v506_v18 = vpack.c.bf16 %v334_v17, %v333_v16 }
  0x1a   :  { %499 = vmatprep.subr.bf16.mxu1 %v580_v19 }
  0x1d   :  { %501 = vmatpush3.bf16.msra.mxu1 %v500_v33 }
  0x22   :  { %v519_v4 = vpop.eup %518 }
  0x23   :  { %520 = vrsqrt.f32 %v519_v4  ;;  %v71_v5 = vsub.f32 1.0, %v519_v4  ;;  %vm60_vm0 = vcmp.eq.f32.partialorder %v519_v4, inf  ;;  %v63_v7 = vand.u32 2147483648, %v519_v4 }
  0x24   :  { %vm62_vm1 = vcmp.eq.f32.partialorder %v519_v4, 0.0 }
  0x25   :  { %522 = vrsqrt.f32 %v71_v5  ;;  %vm74_vm2 = vcmp.eq.f32.partialorder %v71_v5, inf  ;;  %v77_v11 = vand.u32 2147483648, %v71_v5  ;;  %vm76_vm3 = vcmp.eq.f32.partialorder %v71_v5, 0.0 }
  0x2d   :  { %v521_v6 = vpop.eup %520 }
  0x2e   :  { %v59_v8 = vmul.f32 %v521_v6, %v519_v4 }
  0x2f   :  { %v523_v9 = vpop.eup %522 }
  0x30   :  { %v61_v10 = vsel %vm60_vm0, %v519_v4, %v59_v8  ;;  %v73_v13 = vmul.f32 %v523_v9, %v71_v5 }
  0x31   :  { %v64_v12 = vsel %vm62_vm1, %v63_v7, %v61_v10 }
  0x32   :  { %67 = vperm.xlu0 %516, %v64_v12   ;;  %v75_v14 = vsel %vm74_vm2, %v71_v5, %v73_v13  ;;  %v51_v5 = vld [vmem:[%s730_s3 + $0x3] sm:$0x1] }
  0x33   :  { %v78_v15 = vsel %vm76_vm3, %v77_v11, %v75_v14  ;;  %v331_v13 = vld [vmem:[%s733_s6] sm:$0xff]  ;;  %v332_v14 = vld [vmem:[%s733_s6 + $0x8] sm:$0xff] }
  0x36   :  { %81 = vperm.xlu0 %516, %v78_v15   ;;  %v503_v15 = vpack.c.bf16 %v332_v14, %v331_v13 }
  0x94   :  { %v91_v35 = vpop.permute.xlu1 %90 }
  0x95   :  { %v97_v36 = vmul.f32 %v444_v34, %v91_v35 }
  0xb1   :  { %v68_v21 = vpop.permute.xlu0 %67 }
  0xb2   :  { %v70_v25 = vmul.f32 %v68_v21, %v44_v22 }
  0xb5   :  { %v82_v24 = vpop.permute.xlu0 %81 }
  0xb6   :  { %v84_v26 = vmul.f32 %v653_v23, %v82_v24 }
  0xb8   :  { %v85_v27 = vadd.f32 %v84_v26, %v70_v25 }
  0xba   :  { %469 = vmatmul.mubr.msk.f32.vlgmr.msra.gmra.mrb[0].mxu0 %vm98_vm5, %v85_v27 }
  0xbb   :  { %490 = vmatprep.mubr.msk.f32.mxu0 %vm581_vm4, %v582_v20  ;;  %504 = vmatpush3.bf16.msra.mxu0 %v503_v15  ;;  %v447_v20 = vld [vmem:[%s732_s5] ss:$0 sm:$0xff] }
  0xbc   :  { %505 = vmatprep.subr.bf16.mxu0 %v580_v19 }
  0xbf   :  { %507 = vmatpush3.bf16.msra.mxu0 %v506_v18 }
 0x18d   :  { %v168_v38 = vpop.f32.mrb[0].mxu0 }
 0x18e   :  { %v169_v39 = vadd.f32 %v168_v38, %v97_v36  ;;  %v470_v40 = vpop.f32.mrb[1].mxu0 }
 0x190   :  { %v176_v41 = vadd.f32 %v446_v37, %v169_v39 }
 0x192   :  { %v178_v42 = vsel %vm177_vm6, %v176_v41, 0.0  ;;  %v185_v43 = vmul.f32 %v176_v41, %v176_v41 }
 0x193   :  { %v179_v44 = vrot.slane %v178_v42, 4 }
 0x194   :  { %v186_v45 = vsel %vm177_vm6, %v185_v43, 0.0 }
 0x195   :  { %v180_v46 = vadd.f32 %v179_v44, %v178_v42  ;;  %v187_v47 = vrot.slane %v186_v45, 4 }
 0x197   :  { %v181_v48 = vrot.slane %v180_v46, 2  ;;  %v188_v49 = vadd.f32 %v187_v47, %v186_v45  ;;  %v53_v45 = vld [vmem:[%s732_s5 + $0x1] sm:$0x1] }
 0x199   :  { %v182_v50 = vadd.f32 %v181_v48, %v180_v46  ;;  %v189_v51 = vrot.slane %v188_v49, 2  ;;  %v54_v48 = vld [vmem:[%s732_s5 + $0x2] sm:$0x1]  ;;  %s583_s5 = smov [#allocation5]  }
 0x19a   :  { %s434_s0 = sshll.u32 %s583_s5, 4  ;;  %s435_s0 = int_to_ptr.vmem [resolvable:$true] %s434_s0 }
 0x19b   :  { %v183_v52 = vrot.slane %v182_v50, 1  ;;  %v190_v53 = vadd.f32 %v189_v51, %v188_v49  ;;  %s554_s27 = scalar_lea.vmem %s435_s0, 32  ;;  %p555_p9 = scmp.lt.s32.totalorder %s435_s0, %s435_s0 }
 0x19d   :  { %v184_v54 = vadd.f32 %v183_v52, %v182_v50  ;;  %v191_v55 = vrot.slane %v190_v53, 1 }
 0x19f   :  { %v192_v56 = vadd.f32 %v191_v55, %v190_v53  ;;  %v193_v57 = vmul.f32 0.125, %v184_v54 }
 0x1a1   :  { %v194_v58 = vmul.f32 0.125, %v192_v56  ;;  %v195_v59 = vmul.f32 %v193_v57, %v193_v57  ;;  %v449_v56 = vld [vmem:[%s734_s7] ss:$0 sm:$0xff]  ;;  %s550_s7 = scalar_lea.vmem %s435_s0, 16 }
 0x1a2   :  { %p551_p8 = scmp.ne.s32.totalorder %s435_s0, %s550_s7  ;;  %p556_p10 = scmp.lt.s32.totalorder %s554_s27, %s550_s7 }
 0x1a3   :  { %v196_v60 = vsub.f32 %v194_v58, %v195_v59 }
 0x1a4   :  { %p557_p11 = por %p556_p10, %p555_p9 }
 0x1a5   :  { %v197_v61 = vmax.f32 %v196_v60, 0.0 }
 0x1a6   :  { %p558_p12 = pnand %p557_p11, %p551_p8 }
 0x1a7   :  { %v198_v62 = vadd.f32 1e-05, %v197_v61 }
 0x1a9   :  { %524 = vrsqrt.f32 %v198_v62 }
 0x1b3   :  { %v525_v3 = vpop.eup %524 }
 0x1b4   :  { %v200_v4 = vmul.f32 %v525_v3, %v50_v1 }
 0x1b6   :  { %v201_v6 = vmul.f32 %v200_v4, %v193_v57  ;;  %v206_v7 = vrot.slane %v200_v4, %v205_v2 }
 0x1b8   :  { %v202_v8 = vsub.f32 %v51_v5, %v201_v6  ;;  %v207_v9 = vmul.f32 %v206_v7, %v176_v41 }
 0x1ba   :  { %v211_v10 = vrot.slane %v202_v8, %v205_v2 }
 0x1bc   :  { %v212_v11 = vadd.f32 %v211_v10, %v207_v9 }
 0x1be   :  { %v213_v12 = vmax.f32 %v212_v11, 0.0 }
 0x1c0   :  { %480 = vmatmul.mubr.msk.f32.vlgmr.msra.gmra.mrb[0].mxu1 %vm177_vm6, %v213_v12 }
 0x293   :  { %v291_v21 = vpop.f32.mrb[0].mxu1 }
 0x294   :  { %v292_v22 = vadd.f32 %v447_v20, %v291_v21  ;;  %v481_v24 = vpop.f32.mrb[1].mxu1 }
 0x296   :  { %v295_v25 = vsel %vm177_vm6, %v292_v22, 0.0  ;;  %v302_v19 = vmul.f32 %v292_v22, %v292_v22 }
 0x297   :  { %v296_v26 = vrot.slane %v295_v25, 4 }
 0x298   :  { %v303_v27 = vsel %vm177_vm6, %v302_v19, 0.0 }
 0x299   :  { %v297_v28 = vadd.f32 %v296_v26, %v295_v25  ;;  %v304_v29 = vrot.slane %v303_v27, 4 }
 0x29b   :  { %v298_v30 = vrot.slane %v297_v28, 2  ;;  %v305_v31 = vadd.f32 %v304_v29, %v303_v27 }
 0x29d   :  { %v299_v32 = vadd.f32 %v298_v30, %v297_v28  ;;  %v306_v33 = vrot.slane %v305_v31, 2 }
 0x29f   :  { %v300_v34 = vrot.slane %v299_v32, 1  ;;  %v307_v35 = vadd.f32 %v306_v33, %v305_v31 }
 0x2a1   :  { %v301_v36 = vadd.f32 %v300_v34, %v299_v32  ;;  %v308_v37 = vrot.slane %v307_v35, 1 }
 0x2a3   :  { %v309_v38 = vadd.f32 %v308_v37, %v307_v35  ;;  %v310_v39 = vmul.f32 0.125, %v301_v36 }
 0x2a5   :  { %v311_v40 = vmul.f32 0.125, %v309_v38  ;;  %v312_v41 = vmul.f32 %v310_v39, %v310_v39 }
 0x2a7   :  { %v313_v42 = vsub.f32 %v311_v40, %v312_v41 }
 0x2a9   :  { %v314_v43 = vmax.f32 %v313_v42, 0.0 }
 0x2ab   :  { %v315_v44 = vadd.f32 1e-05, %v314_v43 }
 0x2ad   :  { %526 = vrsqrt.f32 %v315_v44 }
 0x2b7   :  { %v527_v46 = vpop.eup %526 }
 0x2b8   :  { %v317_v47 = vmul.f32 %v527_v46, %v53_v45 }
 0x2ba   :  { %v318_v49 = vmul.f32 %v317_v47, %v310_v39  ;;  %v323_v50 = vrot.slane %v317_v47, %v205_v2 }
 0x2bc   :  { %v319_v51 = vsub.f32 %v54_v48, %v318_v49  ;;  %v324_v52 = vmul.f32 %v323_v50, %v292_v22 }
 0x2be   :  { %v328_v53 = vrot.slane %v319_v51, %v205_v2 }
 0x2c0   :  { %v329_v54 = vadd.f32 %v328_v53, %v324_v52 }
 0x2c2   :  { %v330_v55 = vmax.f32 %v329_v54, 0.0 }
 0x2c4   :  { %491 = vmatmul.mubr.msk.f32.vlgmr.msra.gmra.mrb[2].mxu0 %vm177_vm6, %v330_v55 }
 0x397   :  { %v411_v57 = vpop.f32.mrb[2].mxu0 }
 0x398   :  { %v412_v58 = vadd.f32 %v449_v56, %v411_v57  ;;  %v492_v59 = vpop.f32.mrb[3].mxu0 }
 0x39a   :  { %v415_v60 = vsub.f32 %v653_v23, %v412_v58 }
 0x39c   :  { %v416_v61 = vmul.f32 %v415_v60, %v415_v60 }
 0x39e   :  { %v417_v62 = vsel %vm98_vm5, %v416_v61, 0.0 }
 0x39f   :  { %418 = vadd.xlane.f32.xlu1 %v417_v62 }
 0x42c   :  { %v419_v63 = vpop.xlane.xlu1 %418 }
 0x42d   :  { %v420_v0 = vrot.slane %v419_v63, 4 }
 0x42f   :  { %v421_v1 = vadd.f32 %v420_v0, %v419_v63 }
 0x431   :  { %v422_v2 = vrot.slane %v421_v1, 2 }
 0x433   :  { %v423_v3 = vadd.f32 %v422_v2, %v421_v1 }
 0x435   :  { %v424_v4 = vrot.slane %v423_v3, 1 }
 0x437   :  { %v425_v5 = vadd.f32 %v424_v4, %v423_v3 }
 0x439   :  { %v426_v6 = vmul.f32 0.125, %v425_v5 }
 0x43b   :  { %427 = vst [vmem:[#allocation5] sm:$0x1] %v426_v6 }
 0x43c   :  { %561 = shalt.err (!%p558_p12)
}
 0x43d   :  { %s562_s30 = scalar_lea.hbm %s735_s8, 16 }
 0x43e   :  { %p563_p13 = scmp.ne.s32.totalorder %s735_s8, %s562_s30  ;;  %p566_p0 = scmp.lt.u32.totalorder %s562_s30, %s735_s8 }
 0x440   :  { %p568_p1 = pnand %p566_p0, %p563_p13 }
 0x442   :  { %571 = shalt.err (!%p568_p1)
}
 0x443   :  { %437 = dma.vmem_to_hbm [thread:$0]  %s435_s0, 16, %s735_s8, [#allocation4]  }
 0x444   :  { %574 = dma.done.wait [#allocation4], 16  }
 0x445   :  { %575 = vsyncadd [#allocation4], 4294967280 }
 0x446   :  { %441 = vsyncpa [#allocation3], 1 }
 0x447   :  { %442 = vsyncpa [#allocation4], 1 }

</bundles_post_ra>
